<compile_context>
chip_gen: v6e
topology: v6e:2x2x1
jax: 0.10.0
libtpu: 0.0.40
codegen_flags: <defaults>
</compile_context>

<pallas_src>
import jax
import jax.numpy as jnp
from jax.experimental import pallas as pl
from jax.experimental.pallas import tpu as pltpu


# --------------------------------------------------------------------------- #
# Pallas kernel: one MXU matmul per row tile (f32 accumulation).
# --------------------------------------------------------------------------- #
def _pool_matmul_kernel(x_ref, w_ref, o_ref):
    # x_ref: (bt, K)   w_ref: (K, Nout_p) f32   o_ref: (bt, Nout_p)
    o_ref[...] = jnp.dot(
        x_ref[...], w_ref[...], preferred_element_type=jnp.float32
    ).astype(o_ref.dtype)


# --------------------------------------------------------------------------- #
# Host-side helpers (tiny static weight construction, sizing).
# --------------------------------------------------------------------------- #
def _out_size_pair(out_size, H, W):
    if out_size is None or isinstance(out_size, int):
        oh = ow = out_size
    else:
        oh, ow = out_size
    return (H if oh is None else int(oh)), (W if ow is None else int(ow))


def _round_up(v, m):
    return (v + m - 1) // m * m


def _sublane_multiple(dtype):
    # f32 -> 8, bf16/f16 -> 16, int8/fp8 -> 32
    return {1: 32, 2: 16, 4: 8}.get(jnp.dtype(dtype).itemsize, 8)


def _vmem_budget_bytes():
    cap = 64 * 1024 * 1024  # conservative fallback (v7x physical VMEM per TC)
    try:
        info = pltpu.get_tpu_info()
        cap = int(getattr(info, "vmem_capacity_bytes", cap))
    except Exception:
        pass
    # Use ~half of physical VMEM, leaving headroom for Mosaic internals.
    return max(16 * 1024 * 1024, cap // 2)


def _adaptive_weights(in_dim, out_dim):
    """(out_dim, in_dim) row-stochastic f32 matrix for AdaptiveAvgPool1d."""
    i = jnp.arange(out_dim)
    starts = (i * in_dim) // out_dim                       # floor(i*H/Ho)
    ends = ((i + 1) * in_dim + out_dim - 1) // out_dim     # ceil((i+1)*H/Ho)
    pos = jnp.arange(in_dim)
    mask = (pos[None, :] >= starts[:, None]) & (pos[None, :] < ends[:, None])
    return mask.astype(jnp.float32) / (ends - starts)[:, None].astype(jnp.float32)


def _pool_matrix(H, W, Ho, Wo, n_cols):
    """(H*W*2, n_cols) combined separable pooling matrix (f32), zero-padded."""
    wh = _adaptive_weights(H, Ho)                          # (Ho, H)
    ww = _adaptive_weights(W, Wo)                          # (Wo, W)
    outer = jnp.einsum("oh,pw->hwop", wh, ww)              # (H, W, Ho, Wo)
    eye2 = jnp.eye(2, dtype=jnp.float32)
    kmat = jnp.einsum("hwop,cd->hwcopd", outer, eye2)      # (H, W, 2, Ho, Wo, 2)
    kmat = kmat.reshape(H * W * 2, Ho * Wo * 2)
    if n_cols != Ho * Wo * 2:
        kmat = jnp.pad(kmat, ((0, 0), (0, n_cols - Ho * Wo * 2)))
    return kmat


# --------------------------------------------------------------------------- #
# Public wrapper.
# --------------------------------------------------------------------------- #
def complex_adaptive_avg_pool2d(x, out_size):
    """x: (N, C, H, W, 2) -> (N, C, Ho, Wo, 2), matching the PyTorch module."""
    N, C, H, W, two = x.shape
    assert two == 2, "last axis must hold (real, imag)"
    Ho, Wo = _out_size_pair(out_size, H, W)

    K = H * W * 2
    Nout = Ho * Wo * 2
    Nout_p = _round_up(Nout, 128)          # lane-dense stores + native MXU N dim
    M = N * C

    kmat = _pool_matrix(H, W, Ho, Wo, Nout_p)              # small f32 weight
    x2 = x.reshape(M, K)                                   # zero-copy view

    itemsize = jnp.dtype(x.dtype).itemsize
    sub = _sublane_multiple(x.dtype)

    # Row padding only up to the dtype sublane multiple (tiny; usually no-op).
    M_pad = _round_up(M, sub)
    if M_pad != M:
        x2 = jnp.pad(x2, ((0, M_pad - M), (0, 0)))

    # ---- row-tile size from real per-generation VMEM accounting ---------- #
    budget = _vmem_budget_bytes()
    w_bytes = K * Nout_p * 4                               # resident f32 weight
    per_row = 2 * K * itemsize + 2 * Nout_p * itemsize     # double-buffered in/out
    avail = budget - 2 * w_bytes                           # conservative (x2 weight)
    if avail < per_row * sub:
        # TODO(synk): weight-dominated VMEM would need a K-axis grid with an
        # f32 accumulator or the separable two-matmul form.
        avail = per_row * sub
    bt = min(2048, avail // per_row) // sub * sub
    bt = max(sub, min(bt, M_pad))
    # v7x: keep >=4 row tiles so both TensorCores get work, but only when the
    # problem is large enough that the split costs nothing.
    if M_pad >= 4 * 512:
        bt = min(bt, _round_up(pl.cdiv(M_pad, 4), sub))
    num_tiles = pl.cdiv(M_pad, bt)

    vmem_used = 2 * bt * K * itemsize + 2 * bt * Nout_p * itemsize + 2 * w_bytes
    vmem_limit = int(max(vmem_used + (2 << 20), 16 << 20))

    cost = pl.CostEstimate(
        flops=2 * M_pad * K * Nout_p,
        transcendentals=0,
        bytes_accessed=M_pad * K * itemsize + w_bytes + M_pad * Nout_p * itemsize,
    )
    compiler_params = pltpu.CompilerParams(
        dimension_semantics=("parallel",),                 # megacore sharding (v7x)
        vmem_limit_bytes=vmem_limit,
    )
    out_shape = jax.ShapeDtypeStruct((M_pad, Nout_p), x.dtype)
    x_spec = pl.BlockSpec((bt, K), lambda i: (i, 0))       # lane-dense input slab
    out_spec = pl.BlockSpec((bt, Nout_p), lambda i: (i, 0))

    def _call(single_buffer_weight):
        if single_buffer_weight:
            # Constant-index weight: single buffer, halves its VMEM footprint.
            w_spec = pl.BlockSpec((K, Nout_p), lambda i: (0, 0),
                                  pipeline_mode=pl.Buffered(1))
        else:
            w_spec = pl.BlockSpec((K, Nout_p), lambda i: (0, 0))
        return pl.pallas_call(
            _pool_matmul_kernel,
            out_shape=out_shape,
            grid=(num_tiles,),
            in_specs=[x_spec, w_spec],
            out_specs=out_spec,
            compiler_params=compiler_params,
            cost_estimate=cost,
        )(x2, kmat)

    try:
        out2 = _call(True)
    except Exception:
        out2 = _call(False)   # fallback if Buffered(1) unsupported in this Pallas

    return out2[:M, :Nout].reshape(N, C, Ho, Wo, 2)


# --------------------------------------------------------------------------- #
# Pure-JAX reference mirroring the PyTorch forward exactly (for verification).
# --------------------------------------------------------------------------- #
def complex_adaptive_avg_pool2d_ref(x, out_size):
    N, C, H, W, _ = x.shape
    Ho, Wo = _out_size_pair(out_size, H, W)

    def pool_plane(p):  # p: (N, C, H, W)
        rows = []
        for oh in range(Ho):
            hs = (oh * H) // Ho
            he = ((oh + 1) * H + Ho - 1) // Ho
            cols = []
            for ow in range(Wo):
                ws = (ow * W) // Wo
                we = ((ow + 1) * W + Wo - 1) // Wo
                cols.append(jnp.mean(p[:, :, hs:he, ws:we], axis=(2, 3)))
            rows.append(jnp.stack(cols, axis=-1))
        return jnp.stack(rows, axis=-2)                    # (N, C, Ho, Wo)

    return jnp.stack([pool_plane(x[..., 0]), pool_plane(x[..., 1])], axis=-1)


if __name__ == "__main__":
    key = jax.random.PRNGKey(0)
    # (N, C, H, W, 2) complex-valued feature map.
    x = jax.random.normal(key, (2, 4, 16, 16, 2), dtype=jnp.float32)

    # Case 1: divisible output size (uniform windows).
    y = jax.block_until_ready(complex_adaptive_avg_pool2d(x, out_size=4))
    y_ref = complex_adaptive_avg_pool2d_ref(x, out_size=4)
    assert y.shape == (2, 4, 4, 4, 2), y.shape
    assert y.dtype == jnp.float32
    assert jnp.allclose(y, y_ref, atol=1e-5, rtol=1e-5), float(
        jnp.max(jnp.abs(y - y_ref))
    )

    # Case 2: non-divisible output size (true adaptive / uneven windows).
    z = jax.block_until_ready(complex_adaptive_avg_pool2d(x, out_size=(3, 5)))
    z_ref = complex_adaptive_avg_pool2d_ref(x, out_size=(3, 5))
    assert z.shape == (2, 4, 3, 5, 2), z.shape
    assert jnp.allclose(z, z_ref, atol=1e-5, rtol=1e-5), float(
        jnp.max(jnp.abs(z - z_ref))
    )

    print("KERNEL_OK")
</pallas_src>

<mosaic_0001>
module attributes {stable_mosaic.version = 11 : i64} {
  func.func @_pool_matmul_kernel(%arg0: i32, %arg1: memref<8x512xf32, #tpu.memory_space<vmem>>, %arg2: memref<512x128xf32, #tpu.memory_space<vmem>>, %arg3: memref<8x128xf32, #tpu.memory_space<vmem>>) attributes {dimension_semantics = [#tpu.dimension_semantics<parallel>], iteration_bounds = array<i64: 1>, scalar_prefetch = 0 : i64, scratch_operands = 0 : i64, tpu.core_type = #tpu.core_type<tc>, window_params = [{transform_indices = @transform_0, window_bounds = array<i64: 8, 512>}, {pipeline_mode = #tpu.pipeline_mode<synchronous>, transform_indices = @transform_1, window_bounds = array<i64: 512, 128>}, {transform_indices = @transform_2, window_bounds = array<i64: 8, 128>}]} {
    %c0 = arith.constant 0 : index
    %c0_0 = arith.constant 0 : index
    %0 = vector.load %arg1[%c0, %c0_0] : memref<8x512xf32, #tpu.memory_space<vmem>>, vector<8x512xf32>
    %c0_1 = arith.constant 0 : index
    %c0_2 = arith.constant 0 : index
    %1 = vector.load %arg2[%c0_1, %c0_2] : memref<512x128xf32, #tpu.memory_space<vmem>>, vector<512x128xf32>
    %cst = arith.constant dense<0.000000e+00> : vector<8x128xf32>
    %2 = tpu.matmul %0, %1, %cst {dimension_numbers = #tpu.dot_dimension_numbers<[1], [0], [0], [1], [0, 0, 1, 1], [], []>} : vector<8x512xf32>, vector<512x128xf32>, vector<8x128xf32> -> vector<8x128xf32>
    %c0_3 = arith.constant 0 : index
    %c0_4 = arith.constant 0 : index
    %3 = vector.load %arg3[%c0_3, %c0_4] : memref<8x128xf32, #tpu.memory_space<vmem>>, vector<8x128xf32>
    tpu.vector_store %arg3[%c0_3, %c0_4], %2 {strides = array<i32>} : memref<8x128xf32, #tpu.memory_space<vmem>>, vector<8x128xf32>,
    return
  }
  func.func @transform_0(%arg0: i32) -> (i32, i32) {
    %c0_i32 = arith.constant 0 : i32
    %c0_i32_0 = arith.constant 0 : i32
    return %arg0, %c0_i32 : i32, i32
  }
  func.func @transform_1(%arg0: i32) -> (i32, i32) {
    %c0_i32 = arith.constant 0 : i32
    %c0_i32_0 = arith.constant 0 : i32
    %c0_i32_1 = arith.constant 0 : i32
    return %c0_i32, %c0_i32_0 : i32, i32
  }
  func.func @transform_2(%arg0: i32) -> (i32, i32) {
    %c0_i32 = arith.constant 0 : i32
    %c0_i32_0 = arith.constant 0 : i32
    return %arg0, %c0_i32 : i32, i32
  }
}

module attributes {stable_mosaic.version = 11 : i64} {
  func.func @_pool_matmul_kernel(%arg0: i32, %arg1: memref<8x512xf32, #tpu.memory_space<vmem>>, %arg2: memref<512x128xf32, #tpu.memory_space<vmem>>, %arg3: memref<8x128xf32, #tpu.memory_space<vmem>>) attributes {dimension_semantics = [#tpu.dimension_semantics<parallel>], iteration_bounds = array<i64: 1>, scalar_prefetch = 0 : i64, scratch_operands = 0 : i64, tpu.core_type = #tpu.core_type<tc>, window_params = [{transform_indices = @transform_0, window_bounds = array<i64: 8, 512>}, {pipeline_mode = #tpu.pipeline_mode<synchronous>, transform_indices = @transform_1, window_bounds = array<i64: 512, 128>}, {transform_indices = @transform_2, window_bounds = array<i64: 8, 128>}]} {
    %c0 = arith.constant 0 : index
    %c0_0 = arith.constant 0 : index
    %0 = vector.load %arg1[%c0, %c0_0] : memref<8x512xf32, #tpu.memory_space<vmem>>, vector<8x512xf32>
    %c0_1 = arith.constant 0 : index
    %c0_2 = arith.constant 0 : index
    %1 = vector.load %arg2[%c0_1, %c0_2] : memref<512x128xf32, #tpu.memory_space<vmem>>, vector<512x128xf32>
    %cst = arith.constant dense<0.000000e+00> : vector<8x128xf32>
    %2 = tpu.matmul %0, %1, %cst {dimension_numbers = #tpu.dot_dimension_numbers<[1], [0], [0], [1], [0, 0, 1, 1], [], []>} : vector<8x512xf32>, vector<512x128xf32>, vector<8x128xf32> -> vector<8x128xf32>
    %c0_3 = arith.constant 0 : index
    %c0_4 = arith.constant 0 : index
    %3 = vector.load %arg3[%c0_3, %c0_4] : memref<8x128xf32, #tpu.memory_space<vmem>>, vector<8x128xf32>
    tpu.vector_store %arg3[%c0_3, %c0_4], %2 {strides = array<i32>} : memref<8x128xf32, #tpu.memory_space<vmem>>, vector<8x128xf32>,
    return
  }
  func.func @transform_0(%arg0: i32) -> (i32, i32) {
    %c0_i32 = arith.constant 0 : i32
    %c0_i32_0 = arith.constant 0 : i32
    return %arg0, %c0_i32 : i32, i32
  }
  func.func @transform_1(%arg0: i32) -> (i32, i32) {
    %c0_i32 = arith.constant 0 : i32
    %c0_i32_0 = arith.constant 0 : i32
    %c0_i32_1 = arith.constant 0 : i32
    return %c0_i32, %c0_i32_0 : i32, i32
  }
  func.func @transform_2(%arg0: i32) -> (i32, i32) {
    %c0_i32 = arith.constant 0 : i32
    %c0_i32_0 = arith.constant 0 : i32
    return %arg0, %c0_i32 : i32, i32
  }
}

</mosaic_0001>

<bundles_post_ra>
// kernel: tpu_custom_call.1
= control target key start
LH: loop header
LB: loop body
LE: loop exit
PB: predicated region body
PF: predicated region fallthrough
CT: control target
= control target key end

     0   :  { %7 = vsyncpa [#allocation3], 0  ;;  %s433_s0 = inlined_call_operand.hbm [shape: f32[8,512], index: 0, kind: input, shape index: {}]   ;;  %s434_s1 = inlined_call_operand.hbm [shape: f32[512,128], index: 1, kind: input, shape index: {}]   ;;  %s435_s2 = inlined_call_operand.hbm [shape: f32[8,128], index: 2, kind: output, shape index: {}]  }
   0x1   :  { %8 = vsyncpa [#allocation6], 0 }
   0x2   :  { %9 = vsyncpa [#allocation4], 0  ;;  %s404_s9 = smov [#allocation2]   ;;  %s405_s11 = smov [#allocation5]  }
   0x3   :  { %s16_s10 = sshll.u32 %s404_s9, 4  ;;  %s25_s12 = sshll.u32 %s405_s11, 4  ;;  %s17_s10 = int_to_ptr.vmem [resolvable:$true] %s16_s10  ;;  %s26_s12 = int_to_ptr.vmem [resolvable:$true] %s25_s12 }
   0x4   :  { %s346_s13 = scalar_lea.vmem %s17_s10, 512  ;;  %p351_p1 = scmp.lt.s32.totalorder %s17_s10, %s17_s10 }
   0x5   :  { %p347_p0 = scmp.ne.s32.totalorder %s17_s10, %s346_s13  ;;  %p352_p2 = scmp.lt.s32.totalorder %s346_s13, %s346_s13 }
   0x7   :  { %p353_p3 = por %p352_p2, %p351_p1 }
   0x9   :  { %p354_p4 = pnand %p353_p3, %p347_p0 }
   0xb   :  { %357 = shalt.err (!%p354_p4)
}
   0xc   :  { %19 = dma.hbm_to_vmem [thread:$0]  %s433_s0, 512, %s17_s10, [#allocation3]  }
   0xd   :  { %s366_s16 = scalar_lea.vmem %s26_s12, 8192  ;;  %p371_p6 = scmp.lt.s32.totalorder %s26_s12, %s26_s12 }
   0xe   :  { %p367_p5 = scmp.ne.s32.totalorder %s26_s12, %s366_s16  ;;  %p372_p7 = scmp.lt.s32.totalorder %s366_s16, %s366_s16 }
  0x10   :  { %p373_p8 = por %p372_p7, %p371_p6 }
  0x12   :  { %p374_p9 = pnand %p373_p8, %p367_p5 }
  0x14   :  { %377 = shalt.err (!%p374_p9)
}
  0x15   :  { %s406_s17 = smov 128   ;;  %s407_s18 = smov 8  }
  0x16   :  { %31 = dma.hbm_to_vmem [thread:$0]  %s434_s1, 8192, %s26_s12, [#allocation6], %s406_s17, %s406_s17, %s407_s18  }
  0x17   :  { %398 = dma.done.wait [#allocation3], 512  }
  0x18   :  { %399 = vsyncadd [#allocation3], 4294966784 }
  0x19   :  { %400 = dma.done.wait [#allocation6], 8192  }
  0x1a   :  { %401 = vsyncadd [#allocation6], 4294959104  ;;  %v73_v0 = vld [vmem:[#allocation5 + $0xf8] sm:$0xff]  ;;  %v72_v4 = vld [vmem:[#allocation5 + $0xf0] sm:$0xff]  ;;  %s408_s0 = smov [#allocation7]  }
  0x1b   :  { %v105_v1 = vld [vmem:[#allocation5 + $0x1f8] sm:$0xff]  ;;  %263 = vmatprep.subr.mxu0 %v73_v0  ;;  %v104_v5 = vld [vmem:[#allocation5 + $0x1f0] sm:$0xff]  ;;  %v71_v8 = vld [vmem:[#allocation5 + $0xe8] sm:$0xff]  ;;  %s253_s1 = sshll.u32 %s408_s0, 4  ;;  %s254_s1 = int_to_ptr.vmem [resolvable:$true] %s253_s1 }
  0x1c   :  { %v57_v2 = vld [vmem:[#allocation5 + $0x78] sm:$0xff]  ;;  %298 = vmatprep.subr.mxu1 %v105_v1  ;;  %v56_v6 = vld [vmem:[#allocation5 + $0x70] sm:$0xff]  ;;  %v103_v9 = vld [vmem:[#allocation5 + $0x1e8] sm:$0xff]  ;;  %s378_s21 = scalar_lea.vmem %s254_s1, 128  ;;  %p383_p11 = scmp.lt.s32.totalorder %s254_s1, %s254_s1 }
  0x1d   :  { %v89_v3 = vld [vmem:[#allocation5 + $0x178] sm:$0xff]  ;;  %264 = vmatpush3.msra.mxu0 %v57_v2  ;;  %v88_v7 = vld [vmem:[#allocation5 + $0x170] sm:$0xff]  ;;  %v55_v10 = vld [vmem:[#allocation5 + $0x68] sm:$0xff]  ;;  %p379_p10 = scmp.ne.s32.totalorder %s254_s1, %s378_s21  ;;  %p384_p12 = scmp.lt.s32.totalorder %s378_s21, %s378_s21 }
  0x1e   :  { %299 = vmatpush3.msra.mxu1 %v89_v3  ;;  %265 = vmatprep.subr.mxu0 %v72_v4  ;;  %v87_v11 = vld [vmem:[#allocation5 + $0x168] sm:$0xff]  ;;  %v70_v12 = vld [vmem:[#allocation5 + $0xe0] sm:$0xff]  ;;  %v69_v16 = vld [vmem:[#allocation5 + $0xd8] sm:$0xff] }
  0x1f   :  { %300 = vmatprep.subr.mxu1 %v104_v5  ;;  %266 = vmatpush3.msra.mxu0 %v56_v6  ;;  %v102_v13 = vld [vmem:[#allocation5 + $0x1e0] sm:$0xff]  ;;  %v101_v17 = vld [vmem:[#allocation5 + $0x1d8] sm:$0xff]  ;;  %v68_v20 = vld [vmem:[#allocation5 + $0xd0] sm:$0xff]  ;;  %p385_p13 = por %p384_p12, %p383_p11 }
  0x20   :  { %301 = vmatpush3.msra.mxu1 %v88_v7  ;;  %267 = vmatprep.subr.mxu0 %v71_v8  ;;  %v54_v14 = vld [vmem:[#allocation5 + $0x60] sm:$0xff]  ;;  %v53_v18 = vld [vmem:[#allocation5 + $0x58] sm:$0xff]  ;;  %v100_v21 = vld [vmem:[#allocation5 + $0x1d0] sm:$0xff] }
  0x21   :  { %302 = vmatprep.subr.mxu1 %v103_v9  ;;  %v86_v15 = vld [vmem:[#allocation5 + $0x160] sm:$0xff]  ;;  %268 = vmatpush3.msra.mxu0 %v55_v10  ;;  %v85_v19 = vld [vmem:[#allocation5 + $0x158] sm:$0xff]  ;;  %v52_v22 = vld [vmem:[#allocation5 + $0x50] sm:$0xff]  ;;  %p386_p0 = pnand %p385_p13, %p379_p10 }
  0x22   :  { %303 = vmatpush3.msra.mxu1 %v87_v11  ;;  %269 = vmatprep.subr.mxu0 %v70_v12  ;;  %v84_v23 = vld [vmem:[#allocation5 + $0x150] sm:$0xff]  ;;  %v67_v24 = vld [vmem:[#allocation5 + $0xc8] sm:$0xff]  ;;  %v66_v28 = vld [vmem:[#allocation5 + $0xc0] sm:$0xff] }
  0x23   :  { %304 = vmatprep.subr.mxu1 %v102_v13  ;;  %270 = vmatpush3.msra.mxu0 %v54_v14  ;;  %v99_v25 = vld [vmem:[#allocation5 + $0x1c8] sm:$0xff]  ;;  %v98_v29 = vld [vmem:[#allocation5 + $0x1c0] sm:$0xff]  ;;  %v65_v32 = vld [vmem:[#allocation5 + $0xb8] sm:$0xff] }
  0x24   :  { %305 = vmatpush3.msra.mxu1 %v86_v15  ;;  %271 = vmatprep.subr.mxu0 %v69_v16  ;;  %v51_v26 = vld [vmem:[#allocation5 + $0x48] sm:$0xff]  ;;  %v50_v30 = vld [vmem:[#allocation5 + $0x40] sm:$0xff]  ;;  %v97_v33 = vld [vmem:[#allocation5 + $0x1b8] sm:$0xff] }
  0x25   :  { %306 = vmatprep.subr.mxu1 %v101_v17  ;;  %272 = vmatpush3.msra.mxu0 %v53_v18  ;;  %v83_v27 = vld [vmem:[#allocation5 + $0x148] sm:$0xff]  ;;  %v82_v31 = vld [vmem:[#allocation5 + $0x140] sm:$0xff]  ;;  %v49_v34 = vld [vmem:[#allocation5 + $0x38] sm:$0xff] }
  0x26   :  { %307 = vmatpush3.msra.mxu1 %v85_v19  ;;  %273 = vmatprep.subr.mxu0 %v68_v20  ;;  %v81_v35 = vld [vmem:[#allocation5 + $0x138] sm:$0xff]  ;;  %v64_v36 = vld [vmem:[#allocation5 + $0xb0] sm:$0xff]  ;;  %v63_v40 = vld [vmem:[#allocation5 + $0xa8] sm:$0xff] }
  0x27   :  { %308 = vmatprep.subr.mxu1 %v100_v21  ;;  %274 = vmatpush3.msra.mxu0 %v52_v22  ;;  %v96_v37 = vld [vmem:[#allocation5 + $0x1b0] sm:$0xff]  ;;  %v95_v41 = vld [vmem:[#allocation5 + $0x1a8] sm:$0xff]  ;;  %v62_v44 = vld [vmem:[#allocation5 + $0xa0] sm:$0xff] }
  0x28   :  { %309 = vmatpush3.msra.mxu1 %v84_v23  ;;  %275 = vmatprep.subr.mxu0 %v67_v24  ;;  %v48_v38 = vld [vmem:[#allocation5 + $0x30] sm:$0xff]  ;;  %v47_v42 = vld [vmem:[#allocation5 + $0x28] sm:$0xff]  ;;  %v94_v45 = vld [vmem:[#allocation5 + $0x1a0] sm:$0xff] }
  0x29   :  { %310 = vmatprep.subr.mxu1 %v99_v25  ;;  %276 = vmatpush3.msra.mxu0 %v51_v26  ;;  %v80_v39 = vld [vmem:[#allocation5 + $0x130] sm:$0xff]  ;;  %v79_v43 = vld [vmem:[#allocation5 + $0x128] sm:$0xff]  ;;  %v46_v46 = vld [vmem:[#allocation5 + $0x20] sm:$0xff] }
  0x2a   :  { %311 = vmatpush3.msra.mxu1 %v83_v27  ;;  %277 = vmatprep.subr.mxu0 %v66_v28  ;;  %v78_v47 = vld [vmem:[#allocation5 + $0x120] sm:$0xff]  ;;  %v61_v48 = vld [vmem:[#allocation5 + $0x98] sm:$0xff]  ;;  %v60_v52 = vld [vmem:[#allocation5 + $0x90] sm:$0xff] }
  0x2b   :  { %312 = vmatprep.subr.mxu1 %v98_v29  ;;  %278 = vmatpush3.msra.mxu0 %v50_v30  ;;  %v93_v49 = vld [vmem:[#allocation5 + $0x198] sm:$0xff]  ;;  %v92_v53 = vld [vmem:[#allocation5 + $0x190] sm:$0xff]  ;;  %v59_v56 = vld [vmem:[#allocation5 + $0x88] sm:$0xff] }
  0x2c   :  { %313 = vmatpush3.msra.mxu1 %v82_v31  ;;  %279 = vmatprep.subr.mxu0 %v65_v32  ;;  %v45_v50 = vld [vmem:[#allocation5 + $0x18] sm:$0xff]  ;;  %v44_v54 = vld [vmem:[#allocation5 + $0x10] sm:$0xff]  ;;  %v91_v57 = vld [vmem:[#allocation5 + $0x188] sm:$0xff] }
  0x2d   :  { %314 = vmatprep.subr.mxu1 %v97_v33  ;;  %280 = vmatpush3.msra.mxu0 %v49_v34  ;;  %v77_v51 = vld [vmem:[#allocation5 + $0x118] sm:$0xff]  ;;  %v76_v55 = vld [vmem:[#allocation5 + $0x110] sm:$0xff]  ;;  %v43_v58 = vld [vmem:[#allocation5 + $0x8] sm:$0xff] }
  0x2e   :  { %315 = vmatpush3.msra.mxu1 %v81_v35  ;;  %281 = vmatprep.subr.mxu0 %v64_v36  ;;  %v75_v59 = vld [vmem:[#allocation5 + $0x108] sm:$0xff]  ;;  %v58_v60 = vld [vmem:[#allocation5 + $0x80] sm:$0xff]  ;;  %v41_v1 = vld [vmem:[#allocation2 + $0x18] sm:$0xff] }
  0x2f   :  { %316 = vmatprep.subr.mxu1 %v96_v37  ;;  %282 = vmatpush3.msra.mxu0 %v48_v38  ;;  %v90_v61 = vld [vmem:[#allocation5 + $0x180] sm:$0xff]  ;;  %v39_v63 = vld [vmem:[#allocation2 + $0x8] sm:$0xff]  ;;  %v40_v3 = vld [vmem:[#allocation2 + $0x10] sm:$0xff] }
  0x30   :  { %317 = vmatpush3.msra.mxu1 %v80_v39  ;;  %283 = vmatprep.subr.mxu0 %v63_v40  ;;  %v42_v62 = vld [vmem:[#allocation5] sm:$0xff] }
  0x31   :  { %318 = vmatprep.subr.mxu1 %v95_v41  ;;  %284 = vmatpush3.msra.mxu0 %v47_v42  ;;  %v74_v0 = vld [vmem:[#allocation5 + $0x100] sm:$0xff] }
  0x32   :  { %319 = vmatpush3.msra.mxu1 %v79_v43  ;;  %285 = vmatprep.subr.mxu0 %v62_v44  ;;  %v38_v2 = vld [vmem:[#allocation2] sm:$0xff] }
  0x33   :  { %320 = vmatprep.subr.mxu1 %v94_v45  ;;  %286 = vmatpush3.msra.mxu0 %v46_v46 }
  0x34   :  { %321 = vmatpush3.msra.mxu1 %v78_v47  ;;  %287 = vmatprep.subr.mxu0 %v61_v48 }
  0x35   :  { %322 = vmatprep.subr.mxu1 %v93_v49  ;;  %288 = vmatpush3.msra.mxu0 %v45_v50 }
  0x36   :  { %323 = vmatpush3.msra.mxu1 %v77_v51  ;;  %289 = vmatprep.subr.mxu0 %v60_v52 }
  0x37   :  { %324 = vmatprep.subr.mxu1 %v92_v53  ;;  %290 = vmatpush3.msra.mxu0 %v44_v54 }
  0x38   :  { %325 = vmatpush3.msra.mxu1 %v76_v55  ;;  %291 = vmatprep.subr.mxu0 %v59_v56 }
  0x39   :  { %326 = vmatprep.subr.mxu1 %v91_v57  ;;  %292 = vmatpush3.msra.mxu0 %v43_v58 }
  0x3a   :  { %327 = vmatpush3.msra.mxu1 %v75_v59  ;;  %293 = vmatprep.subr.mxu0 %v58_v60 }
  0x3b   :  { %328 = vmatprep.subr.mxu1 %v90_v61  ;;  %294 = vmatpush3.msra.mxu0 %v42_v62 }
  0x3c   :  { %170 = vmatprep.mubr.f32.mxu0 %v39_v63  ;;  %329 = vmatpush3.msra.mxu1 %v74_v0 }
  0x3d   :  { %240 = vmatprep.mubr.f32.mxu1 %v41_v1  ;;  %171 = vmatmul.mubr.f32.vlgmr.msra.gmra.mxu0 %v38_v2 }
  0x3e   :  { %241 = vmatmul.mubr.f32.vlgmr.msra.gmra.mxu1 %v40_v3 }
  0xfd   :  { %v295_v4 = vpop.f32.mrf.mxu0 }
  0xfe   :  { %v330_v5 = vpop.f32.mrf.mxu1 }
  0xff   :  { %v296_v6 = vpop.f32.mrf.mxu0 }
 0x100   :  { %v331_v7 = vpop.f32.mrf.mxu1  ;;  %v297_v8 = vadd.f32 %v296_v6, %v295_v4 }
 0x101   :  { %v332_v9 = vadd.f32 %v331_v7, %v330_v5 }
 0x103   :  { %v243_v10 = vadd.f32 %v332_v9, %v297_v8 }
 0x105   :  { %246 = vst [vmem:[#allocation7] sm:$0xff] %v243_v10 }
 0x106   :  { %389 = shalt.err (!%p386_p0)
}
 0x107   :  { %256 = dma.vmem_to_hbm [thread:$0]  %s254_s1, 128, %s435_s2, [#allocation4]  }
 0x108   :  { %402 = dma.done.wait [#allocation4], 128  }
 0x109   :  { %403 = vsyncadd [#allocation4], 4294967168 }
 0x10a   :  { %260 = vsyncpa [#allocation3], 1 }
 0x10b   :  { %261 = vsyncpa [#allocation6], 1 }
 0x10c   :  { %262 = vsyncpa [#allocation4], 1 }

// kernel: tpu_custom_call.1
= control target key start
LH: loop header
LB: loop body
LE: loop exit
PB: predicated region body
PF: predicated region fallthrough
CT: control target
= control target key end

     0   :  { %7 = vsyncpa [#allocation3], 0  ;;  %s433_s0 = inlined_call_operand.hbm [shape: f32[8,512], index: 0, kind: input, shape index: {}]   ;;  %s434_s1 = inlined_call_operand.hbm [shape: f32[512,128], index: 1, kind: input, shape index: {}]   ;;  %s435_s2 = inlined_call_operand.hbm [shape: f32[8,128], index: 2, kind: output, shape index: {}]  }
   0x1   :  { %8 = vsyncpa [#allocation6], 0 }
   0x2   :  { %9 = vsyncpa [#allocation4], 0  ;;  %s404_s9 = smov [#allocation2]   ;;  %s405_s11 = smov [#allocation5]  }
   0x3   :  { %s16_s10 = sshll.u32 %s404_s9, 4  ;;  %s25_s12 = sshll.u32 %s405_s11, 4  ;;  %s17_s10 = int_to_ptr.vmem [resolvable:$true] %s16_s10  ;;  %s26_s12 = int_to_ptr.vmem [resolvable:$true] %s25_s12 }
   0x4   :  { %s346_s13 = scalar_lea.vmem %s17_s10, 512  ;;  %p351_p1 = scmp.lt.s32.totalorder %s17_s10, %s17_s10 }
   0x5   :  { %p347_p0 = scmp.ne.s32.totalorder %s17_s10, %s346_s13  ;;  %p352_p2 = scmp.lt.s32.totalorder %s346_s13, %s346_s13 }
   0x7   :  { %p353_p3 = por %p352_p2, %p351_p1 }
   0x9   :  { %p354_p4 = pnand %p353_p3, %p347_p0 }
   0xb   :  { %357 = shalt.err (!%p354_p4)
}
   0xc   :  { %19 = dma.hbm_to_vmem [thread:$0]  %s433_s0, 512, %s17_s10, [#allocation3]  }
   0xd   :  { %s366_s16 = scalar_lea.vmem %s26_s12, 8192  ;;  %p371_p6 = scmp.lt.s32.totalorder %s26_s12, %s26_s12 }
   0xe   :  { %p367_p5 = scmp.ne.s32.totalorder %s26_s12, %s366_s16  ;;  %p372_p7 = scmp.lt.s32.totalorder %s366_s16, %s366_s16 }
  0x10   :  { %p373_p8 = por %p372_p7, %p371_p6 }
  0x12   :  { %p374_p9 = pnand %p373_p8, %p367_p5 }
  0x14   :  { %377 = shalt.err (!%p374_p9)
}
  0x15   :  { %s406_s17 = smov 128   ;;  %s407_s18 = smov 8  }
  0x16   :  { %31 = dma.hbm_to_vmem [thread:$0]  %s434_s1, 8192, %s26_s12, [#allocation6], %s406_s17, %s406_s17, %s407_s18  }
  0x17   :  { %398 = dma.done.wait [#allocation3], 512  }
  0x18   :  { %399 = vsyncadd [#allocation3], 4294966784 }
  0x19   :  { %400 = dma.done.wait [#allocation6], 8192  }
  0x1a   :  { %401 = vsyncadd [#allocation6], 4294959104  ;;  %v73_v0 = vld [vmem:[#allocation5 + $0xf8] sm:$0xff]  ;;  %v72_v4 = vld [vmem:[#allocation5 + $0xf0] sm:$0xff]  ;;  %s408_s0 = smov [#allocation7]  }
  0x1b   :  { %v105_v1 = vld [vmem:[#allocation5 + $0x1f8] sm:$0xff]  ;;  %263 = vmatprep.subr.mxu0 %v73_v0  ;;  %v104_v5 = vld [vmem:[#allocation5 + $0x1f0] sm:$0xff]  ;;  %v71_v8 = vld [vmem:[#allocation5 + $0xe8] sm:$0xff]  ;;  %s253_s1 = sshll.u32 %s408_s0, 4  ;;  %s254_s1 = int_to_ptr.vmem [resolvable:$true] %s253_s1 }
  0x1c   :  { %v57_v2 = vld [vmem:[#allocation5 + $0x78] sm:$0xff]  ;;  %298 = vmatprep.subr.mxu1 %v105_v1  ;;  %v56_v6 = vld [vmem:[#allocation5 + $0x70] sm:$0xff]  ;;  %v103_v9 = vld [vmem:[#allocation5 + $0x1e8] sm:$0xff]  ;;  %s378_s21 = scalar_lea.vmem %s254_s1, 128  ;;  %p383_p11 = scmp.lt.s32.totalorder %s254_s1, %s254_s1 }
  0x1d   :  { %v89_v3 = vld [vmem:[#allocation5 + $0x178] sm:$0xff]  ;;  %264 = vmatpush3.msra.mxu0 %v57_v2  ;;  %v88_v7 = vld [vmem:[#allocation5 + $0x170] sm:$0xff]  ;;  %v55_v10 = vld [vmem:[#allocation5 + $0x68] sm:$0xff]  ;;  %p379_p10 = scmp.ne.s32.totalorder %s254_s1, %s378_s21  ;;  %p384_p12 = scmp.lt.s32.totalorder %s378_s21, %s378_s21 }
  0x1e   :  { %299 = vmatpush3.msra.mxu1 %v89_v3  ;;  %265 = vmatprep.subr.mxu0 %v72_v4  ;;  %v87_v11 = vld [vmem:[#allocation5 + $0x168] sm:$0xff]  ;;  %v70_v12 = vld [vmem:[#allocation5 + $0xe0] sm:$0xff]  ;;  %v69_v16 = vld [vmem:[#allocation5 + $0xd8] sm:$0xff] }
  0x1f   :  { %300 = vmatprep.subr.mxu1 %v104_v5  ;;  %266 = vmatpush3.msra.mxu0 %v56_v6  ;;  %v102_v13 = vld [vmem:[#allocation5 + $0x1e0] sm:$0xff]  ;;  %v101_v17 = vld [vmem:[#allocation5 + $0x1d8] sm:$0xff]  ;;  %v68_v20 = vld [vmem:[#allocation5 + $0xd0] sm:$0xff]  ;;  %p385_p13 = por %p384_p12, %p383_p11 }
  0x20   :  { %301 = vmatpush3.msra.mxu1 %v88_v7  ;;  %267 = vmatprep.subr.mxu0 %v71_v8  ;;  %v54_v14 = vld [vmem:[#allocation5 + $0x60] sm:$0xff]  ;;  %v53_v18 = vld [vmem:[#allocation5 + $0x58] sm:$0xff]  ;;  %v100_v21 = vld [vmem:[#allocation5 + $0x1d0] sm:$0xff] }
  0x21   :  { %302 = vmatprep.subr.mxu1 %v103_v9  ;;  %v86_v15 = vld [vmem:[#allocation5 + $0x160] sm:$0xff]  ;;  %268 = vmatpush3.msra.mxu0 %v55_v10  ;;  %v85_v19 = vld [vmem:[#allocation5 + $0x158] sm:$0xff]  ;;  %v52_v22 = vld [vmem:[#allocation5 + $0x50] sm:$0xff]  ;;  %p386_p0 = pnand %p385_p13, %p379_p10 }
  0x22   :  { %303 = vmatpush3.msra.mxu1 %v87_v11  ;;  %269 = vmatprep.subr.mxu0 %v70_v12  ;;  %v84_v23 = vld [vmem:[#allocation5 + $0x150] sm:$0xff]  ;;  %v67_v24 = vld [vmem:[#allocation5 + $0xc8] sm:$0xff]  ;;  %v66_v28 = vld [vmem:[#allocation5 + $0xc0] sm:$0xff] }
  0x23   :  { %304 = vmatprep.subr.mxu1 %v102_v13  ;;  %270 = vmatpush3.msra.mxu0 %v54_v14  ;;  %v99_v25 = vld [vmem:[#allocation5 + $0x1c8] sm:$0xff]  ;;  %v98_v29 = vld [vmem:[#allocation5 + $0x1c0] sm:$0xff]  ;;  %v65_v32 = vld [vmem:[#allocation5 + $0xb8] sm:$0xff] }
  0x24   :  { %305 = vmatpush3.msra.mxu1 %v86_v15  ;;  %271 = vmatprep.subr.mxu0 %v69_v16  ;;  %v51_v26 = vld [vmem:[#allocation5 + $0x48] sm:$0xff]  ;;  %v50_v30 = vld [vmem:[#allocation5 + $0x40] sm:$0xff]  ;;  %v97_v33 = vld [vmem:[#allocation5 + $0x1b8] sm:$0xff] }
  0x25   :  { %306 = vmatprep.subr.mxu1 %v101_v17  ;;  %272 = vmatpush3.msra.mxu0 %v53_v18  ;;  %v83_v27 = vld [vmem:[#allocation5 + $0x148] sm:$0xff]  ;;  %v82_v31 = vld [vmem:[#allocation5 + $0x140] sm:$0xff]  ;;  %v49_v34 = vld [vmem:[#allocation5 + $0x38] sm:$0xff] }
  0x26   :  { %307 = vmatpush3.msra.mxu1 %v85_v19  ;;  %273 = vmatprep.subr.mxu0 %v68_v20  ;;  %v81_v35 = vld [vmem:[#allocation5 + $0x138] sm:$0xff]  ;;  %v64_v36 = vld [vmem:[#allocation5 + $0xb0] sm:$0xff]  ;;  %v63_v40 = vld [vmem:[#allocation5 + $0xa8] sm:$0xff] }
  0x27   :  { %308 = vmatprep.subr.mxu1 %v100_v21  ;;  %274 = vmatpush3.msra.mxu0 %v52_v22  ;;  %v96_v37 = vld [vmem:[#allocation5 + $0x1b0] sm:$0xff]  ;;  %v95_v41 = vld [vmem:[#allocation5 + $0x1a8] sm:$0xff]  ;;  %v62_v44 = vld [vmem:[#allocation5 + $0xa0] sm:$0xff] }
  0x28   :  { %309 = vmatpush3.msra.mxu1 %v84_v23  ;;  %275 = vmatprep.subr.mxu0 %v67_v24  ;;  %v48_v38 = vld [vmem:[#allocation5 + $0x30] sm:$0xff]  ;;  %v47_v42 = vld [vmem:[#allocation5 + $0x28] sm:$0xff]  ;;  %v94_v45 = vld [vmem:[#allocation5 + $0x1a0] sm:$0xff] }
  0x29   :  { %310 = vmatprep.subr.mxu1 %v99_v25  ;;  %276 = vmatpush3.msra.mxu0 %v51_v26  ;;  %v80_v39 = vld [vmem:[#allocation5 + $0x130] sm:$0xff]  ;;  %v79_v43 = vld [vmem:[#allocation5 + $0x128] sm:$0xff]  ;;  %v46_v46 = vld [vmem:[#allocation5 + $0x20] sm:$0xff] }
  0x2a   :  { %311 = vmatpush3.msra.mxu1 %v83_v27  ;;  %277 = vmatprep.subr.mxu0 %v66_v28  ;;  %v78_v47 = vld [vmem:[#allocation5 + $0x120] sm:$0xff]  ;;  %v61_v48 = vld [vmem:[#allocation5 + $0x98] sm:$0xff]  ;;  %v60_v52 = vld [vmem:[#allocation5 + $0x90] sm:$0xff] }
  0x2b   :  { %312 = vmatprep.subr.mxu1 %v98_v29  ;;  %278 = vmatpush3.msra.mxu0 %v50_v30  ;;  %v93_v49 = vld [vmem:[#allocation5 + $0x198] sm:$0xff]  ;;  %v92_v53 = vld [vmem:[#allocation5 + $0x190] sm:$0xff]  ;;  %v59_v56 = vld [vmem:[#allocation5 + $0x88] sm:$0xff] }
  0x2c   :  { %313 = vmatpush3.msra.mxu1 %v82_v31  ;;  %279 = vmatprep.subr.mxu0 %v65_v32  ;;  %v45_v50 = vld [vmem:[#allocation5 + $0x18] sm:$0xff]  ;;  %v44_v54 = vld [vmem:[#allocation5 + $0x10] sm:$0xff]  ;;  %v91_v57 = vld [vmem:[#allocation5 + $0x188] sm:$0xff] }
  0x2d   :  { %314 = vmatprep.subr.mxu1 %v97_v33  ;;  %280 = vmatpush3.msra.mxu0 %v49_v34  ;;  %v77_v51 = vld [vmem:[#allocation5 + $0x118] sm:$0xff]  ;;  %v76_v55 = vld [vmem:[#allocation5 + $0x110] sm:$0xff]  ;;  %v43_v58 = vld [vmem:[#allocation5 + $0x8] sm:$0xff] }
  0x2e   :  { %315 = vmatpush3.msra.mxu1 %v81_v35  ;;  %281 = vmatprep.subr.mxu0 %v64_v36  ;;  %v75_v59 = vld [vmem:[#allocation5 + $0x108] sm:$0xff]  ;;  %v58_v60 = vld [vmem:[#allocation5 + $0x80] sm:$0xff]  ;;  %v41_v1 = vld [vmem:[#allocation2 + $0x18] sm:$0xff] }
  0x2f   :  { %316 = vmatprep.subr.mxu1 %v96_v37  ;;  %282 = vmatpush3.msra.mxu0 %v48_v38  ;;  %v90_v61 = vld [vmem:[#allocation5 + $0x180] sm:$0xff]  ;;  %v39_v63 = vld [vmem:[#allocation2 + $0x8] sm:$0xff]  ;;  %v40_v3 = vld [vmem:[#allocation2 + $0x10] sm:$0xff] }
  0x30   :  { %317 = vmatpush3.msra.mxu1 %v80_v39  ;;  %283 = vmatprep.subr.mxu0 %v63_v40  ;;  %v42_v62 = vld [vmem:[#allocation5] sm:$0xff] }
  0x31   :  { %318 = vmatprep.subr.mxu1 %v95_v41  ;;  %284 = vmatpush3.msra.mxu0 %v47_v42  ;;  %v74_v0 = vld [vmem:[#allocation5 + $0x100] sm:$0xff] }
  0x32   :  { %319 = vmatpush3.msra.mxu1 %v79_v43  ;;  %285 = vmatprep.subr.mxu0 %v62_v44  ;;  %v38_v2 = vld [vmem:[#allocation2] sm:$0xff] }
  0x33   :  { %320 = vmatprep.subr.mxu1 %v94_v45  ;;  %286 = vmatpush3.msra.mxu0 %v46_v46 }
  0x34   :  { %321 = vmatpush3.msra.mxu1 %v78_v47  ;;  %287 = vmatprep.subr.mxu0 %v61_v48 }
  0x35   :  { %322 = vmatprep.subr.mxu1 %v93_v49  ;;  %288 = vmatpush3.msra.mxu0 %v45_v50 }
  0x36   :  { %323 = vmatpush3.msra.mxu1 %v77_v51  ;;  %289 = vmatprep.subr.mxu0 %v60_v52 }
  0x37   :  { %324 = vmatprep.subr.mxu1 %v92_v53  ;;  %290 = vmatpush3.msra.mxu0 %v44_v54 }
  0x38   :  { %325 = vmatpush3.msra.mxu1 %v76_v55  ;;  %291 = vmatprep.subr.mxu0 %v59_v56 }
  0x39   :  { %326 = vmatprep.subr.mxu1 %v91_v57  ;;  %292 = vmatpush3.msra.mxu0 %v43_v58 }
  0x3a   :  { %327 = vmatpush3.msra.mxu1 %v75_v59  ;;  %293 = vmatprep.subr.mxu0 %v58_v60 }
  0x3b   :  { %328 = vmatprep.subr.mxu1 %v90_v61  ;;  %294 = vmatpush3.msra.mxu0 %v42_v62 }
  0x3c   :  { %170 = vmatprep.mubr.f32.mxu0 %v39_v63  ;;  %329 = vmatpush3.msra.mxu1 %v74_v0 }
  0x3d   :  { %240 = vmatprep.mubr.f32.mxu1 %v41_v1  ;;  %171 = vmatmul.mubr.f32.vlgmr.msra.gmra.mxu0 %v38_v2 }
  0x3e   :  { %241 = vmatmul.mubr.f32.vlgmr.msra.gmra.mxu1 %v40_v3 }
  0xfd   :  { %v295_v4 = vpop.f32.mrf.mxu0 }
  0xfe   :  { %v330_v5 = vpop.f32.mrf.mxu1 }
  0xff   :  { %v296_v6 = vpop.f32.mrf.mxu0 }
 0x100   :  { %v331_v7 = vpop.f32.mrf.mxu1  ;;  %v297_v8 = vadd.f32 %v296_v6, %v295_v4 }
 0x101   :  { %v332_v9 = vadd.f32 %v331_v7, %v330_v5 }
 0x103   :  { %v243_v10 = vadd.f32 %v332_v9, %v297_v8 }
 0x105   :  { %246 = vst [vmem:[#allocation7] sm:$0xff] %v243_v10 }
 0x106   :  { %389 = shalt.err (!%p386_p0)
}
 0x107   :  { %256 = dma.vmem_to_hbm [thread:$0]  %s254_s1, 128, %s435_s2, [#allocation4]  }
 0x108   :  { %402 = dma.done.wait [#allocation4], 128  }
 0x109   :  { %403 = vsyncadd [#allocation4], 4294967168 }
 0x10a   :  { %260 = vsyncpa [#allocation3], 1 }
 0x10b   :  { %261 = vsyncpa [#allocation6], 1 }
 0x10c   :  { %262 = vsyncpa [#allocation4], 1 }

</bundles_post_ra>
